<compile_context>
chip_gen: v7x
topology: tpu7x:2x2x1
jax: 0.10.0
libtpu: 0.0.40
codegen_flags: <defaults>
</compile_context>

<pallas_src>
import jax
import jax.numpy as jnp
from jax.experimental import pallas as pl
from jax.experimental.pallas import tpu as pltpu


def _proj_kernel(x_ref, w_ref, b_ref, o_ref):
    x = x_ref[...]
    w = w_ref[...]
    # Native single-pass bf16 MXU path; accumulation stays f32.
    if x.dtype == jnp.float32:
        x = x.astype(jnp.bfloat16)
    if w.dtype == jnp.float32:
        w = w.astype(jnp.bfloat16)
    acc = jnp.dot(x, w, preferred_element_type=jnp.float32)
    acc = acc + b_ref[...].astype(jnp.float32)
    o_ref[...] = acc.astype(o_ref.dtype)


def _vmem_budget_bytes():
    cap = 64 << 20  # conservative default: v7x per-TensorCore VMEM
    try:
        info = pltpu.get_tpu_info()
        for attr in ("vmem_capacity_bytes", "vmem_size_bytes", "vmem_bytes"):
            v = getattr(info, attr, None)
            if v:
                cap = int(v)
                break
    except Exception:
        pass
    # Leave ~1/4 headroom for compiler-internal scratch:
    # 128 MiB (v5e/v6e) -> 96 MiB, 64 MiB (v7x) -> 48 MiB.
    return max(32 << 20, (cap * 3) // 4)


def _choose_tiles(rows, C, D, x_dtype, w_dtype, out_dtype, budget):
    """VMEM/dtype/MXU-aware (row, out-feature) tile selection."""
    isz = jnp.dtype(x_dtype).itemsize
    wsz = jnp.dtype(w_dtype).itemsize
    osz = jnp.dtype(out_dtype).itemsize
    sub = max(8, 32 // max(isz, 1))  # sublane pack: 8 f32, 16 bf16, 32 int8
    headroom = 4 << 20

    def max_tm(td):
        fixed = 2 * C * td * wsz + 2 * td * 4 + headroom  # dbl-buffered w + bias
        avail = budget - fixed
        if avail <= 0:
            return 0
        per_row = 2 * C * isz + 2 * td * osz + td * 4  # dbl-buf x/out + f32 acc
        return int(avail // per_row)

    td = D
    tm_cap = max_tm(td)
    if tm_cap < min(256, rows) and D > 128:
        # Resident weights don't fit (e.g. v7x, large fused QKV): tile D.
        td = 128
        for cand in range((D // 128) * 128, 127, -128):
            if max_tm(cand) >= min(256, rows):
                td = cand
                break
        tm_cap = max_tm(td)
        # TODO(synk): add a K (C) reduction grid axis if even a (C, 128)
        # weight block does not fit in VMEM for extremely large C.
    tm_cap = max(tm_cap, sub)

    tm = min(tm_cap, 1024)
    if rows <= tm:
        tm = rows  # single full-extent row block (always layout-legal)
    else:
        tm = (tm // sub) * sub
        for align in (512, 256, 128, sub):  # MXU-friendly M alignment
            if tm >= align:
                tm = (tm // align) * align
                break
        tm = max(tm, sub)
    return tm, td


def _project(x2d, w, b):
    """x2d: (rows, C); w: (C, D); b: (D,). Returns x2d @ w + b (f32 accum)."""
    rows, C = x2d.shape
    D = w.shape[1]
    out_dtype = x2d.dtype
    budget = _vmem_budget_bytes()
    tm, td = _choose_tiles(rows, C, D, x2d.dtype, w.dtype, out_dtype, budget)
    grid = (pl.cdiv(D, td), pl.cdiv(rows, tm))

    cost = pl.CostEstimate(
        flops=2 * rows * C * D,
        transcendentals=0,
        bytes_accessed=(
            grid[0] * rows * C * jnp.dtype(x2d.dtype).itemsize  # x per d slab
            + C * D * jnp.dtype(w.dtype).itemsize
            + D * jnp.dtype(b.dtype).itemsize
            + rows * D * jnp.dtype(out_dtype).itemsize
        ),
    )

    return pl.pallas_call(
        _proj_kernel,
        out_shape=jax.ShapeDtypeStruct((rows, D), out_dtype),
        grid=grid,
        in_specs=[
            pl.BlockSpec((tm, C), lambda d, r: (r, 0)),   # x rows (stream)
            pl.BlockSpec((C, td), lambda d, r: (0, d)),   # weight slab (resident per d)
            pl.BlockSpec((1, td), lambda d, r: (0, d)),   # bias slab
        ],
        out_specs=pl.BlockSpec((tm, td), lambda d, r: (r, d)),
        compiler_params=pltpu.CompilerParams(
            dimension_semantics=("parallel", "parallel"),
            vmem_limit_bytes=int(budget),
        ),
        cost_estimate=cost,
    )(x2d, w, b.reshape(1, D))


def prepare_params(params):
    """One-time parameter prep (outside the forward): fuse q/kv weights."""
    wq, bq, wkv, bkv = params
    return {
        "wq": wq, "bq": bq, "wkv": wkv, "bkv": bkv,
        "w_qkv": jnp.concatenate([wq, wkv], axis=1),   # (C, 3*inner)
        "b_qkv": jnp.concatenate([bq, bkv], axis=0),   # (3*inner,)
    }


def linear_projection(x, prepared, heads, attn_kv=None):
    """Pallas implementation of LinearProjection.forward.

    x:        (B, N, C)
    prepared: dict from prepare_params (weights stored as (in, out)).
    attn_kv:  optional (N_kv, C), shared across the batch.
    Returns q (B, heads, N, C//heads), k, v (B, heads, N_kv, C//heads).
    """
    B, N, C = x.shape
    inner = prepared["wq"].shape[1]
    dim_head = C // heads  # matches the PyTorch reshape (C // self.heads)

    if attn_kv is None:
        # Fused q/kv projection: x streamed from HBM exactly once.
        qkv = _project(x.reshape(B * N, C), prepared["w_qkv"], prepared["b_qkv"])
        qkv = qkv.reshape(B, N, 3 * inner)
        q = qkv[..., :inner]
        kv = qkv[..., inner:]
        n_kv = N
    else:
        q = _project(x.reshape(B * N, C), prepared["wq"], prepared["bq"])
        q = q.reshape(B, N, inner)
        n_kv = attn_kv.shape[0]
        # attn_kv is shared across the batch: project ONCE, broadcast result.
        kv1 = _project(attn_kv, prepared["wkv"], prepared["bkv"])  # (Nkv, 2*inner)
        kv = jnp.broadcast_to(kv1[None], (B, n_kv, 2 * inner))

    # Head split + permute (layout plumbing, kept outside the kernel; a
    # downstream attention kernel could fuse this into its BlockSpec instead).
    q = q.reshape(B, N, heads, dim_head).transpose(0, 2, 1, 3)
    kv = kv.reshape(B, n_kv, 2, heads, dim_head).transpose(2, 0, 3, 1, 4)
    return q, kv[0], kv[1]


if __name__ == "__main__":
    key = jax.random.PRNGKey(0)
    k1, k2, k3, k4, k5, k6 = jax.random.split(key, 6)

    # Small deterministic shapes. The module's reshape requires inner_dim == C.
    B, N, heads, dim_head = 2, 8, 4, 8
    C = heads * dim_head          # dim = 32
    inner = heads * dim_head      # inner_dim = 32

    x = jax.random.normal(k1, (B, N, C), dtype=jnp.float32)

    # nn.Linear-style init, weights stored as (in, out).
    bound = 1.0 / jnp.sqrt(jnp.float32(C))
    wq = jax.random.uniform(k2, (C, inner), jnp.float32, -bound, bound)
    bq = jax.random.uniform(k3, (inner,), jnp.float32, -bound, bound)
    wkv = jax.random.uniform(k4, (C, 2 * inner), jnp.float32, -bound, bound)
    bkv = jax.random.uniform(k5, (2 * inner,), jnp.float32, -bound, bound)

    prepared = prepare_params((wq, bq, wkv, bkv))

    def ref(x_in, attn_kv=None):
        # Reference uses the same bf16-operand / f32-accumulate math as the
        # native MXU path, so the comparison is apples-to-apples.
        def proj(a, w, b):
            return jnp.dot(a.astype(jnp.bfloat16), w.astype(jnp.bfloat16),
                           preferred_element_type=jnp.float32) + b
        Bq, Nq, Cq = x_in.shape
        akv = x_in if attn_kv is None else jnp.broadcast_to(
            attn_kv[None], (Bq,) + attn_kv.shape)
        Nk = akv.shape[1]
        dh = Cq // heads
        qr = proj(x_in, wq, bq)
        kvr = proj(akv, wkv, bkv)
        qr = qr.reshape(Bq, Nq, heads, dh).transpose(0, 2, 1, 3)
        kvr = kvr.reshape(Bq, Nk, 2, heads, dh).transpose(2, 0, 3, 1, 4)
        return qr, kvr[0], kvr[1]

    # --- self-attention path (attn_kv=None) ---
    q, k, v = linear_projection(x, prepared, heads)
    jax.block_until_ready((q, k, v))
    qr, kr, vr = ref(x)
    assert jnp.allclose(q, qr, atol=1e-3, rtol=1e-3), "q mismatch (self)"
    assert jnp.allclose(k, kr, atol=1e-3, rtol=1e-3), "k mismatch (self)"
    assert jnp.allclose(v, vr, atol=1e-3, rtol=1e-3), "v mismatch (self)"

    # --- cross-attention path (attn_kv provided, shared across batch) ---
    attn_kv = jax.random.normal(k6, (16, C), dtype=jnp.float32)
    q2, k2_, v2 = linear_projection(x, prepared, heads, attn_kv=attn_kv)
    jax.block_until_ready((q2, k2_, v2))
    qr2, kr2, vr2 = ref(x, attn_kv)
    assert jnp.allclose(q2, qr2, atol=1e-3, rtol=1e-3), "q mismatch (cross)"
    assert jnp.allclose(k2_, kr2, atol=1e-3, rtol=1e-3), "k mismatch (cross)"
    assert jnp.allclose(v2, vr2, atol=1e-3, rtol=1e-3), "v mismatch (cross)"

    print("KERNEL_OK")
</pallas_src>

<mosaic_0001>
module attributes {stable_mosaic.version = 11 : i64} {
  func.func @_proj_kernel(%arg0: i32, %arg1: i32, %arg2: memref<16x32xf32, #tpu.memory_space<vmem>>, %arg3: memref<32x96xf32, #tpu.memory_space<vmem>>, %arg4: memref<1x96xf32, #tpu.memory_space<vmem>>, %arg5: memref<16x96xf32, #tpu.memory_space<vmem>>) attributes {dimension_semantics = [#tpu.dimension_semantics<parallel>, #tpu.dimension_semantics<parallel>], iteration_bounds = array<i64: 1, 1>, scalar_prefetch = 0 : i64, scratch_operands = 0 : i64, tpu.core_type = #tpu.core_type<tc>, window_params = [{transform_indices = @transform_0, window_bounds = array<i64: 16, 32>}, {transform_indices = @transform_1, window_bounds = array<i64: 32, 96>}, {transform_indices = @transform_2, window_bounds = array<i64: 1, 96>}, {transform_indices = @transform_3, window_bounds = array<i64: 16, 96>}]} {
    %c0 = arith.constant 0 : index
    %c0_0 = arith.constant 0 : index
    %0 = vector.load %arg2[%c0, %c0_0] : memref<16x32xf32, #tpu.memory_space<vmem>>, vector<16x32xf32>
    %c0_1 = arith.constant 0 : index
    %c0_2 = arith.constant 0 : index
    %1 = vector.load %arg3[%c0_1, %c0_2] : memref<32x96xf32, #tpu.memory_space<vmem>>, vector<32x96xf32>
    %2 = arith.truncf %0 : vector<16x32xf32> to vector<16x32xbf16>
    %3 = arith.truncf %1 : vector<32x96xf32> to vector<32x96xbf16>
    %cst = arith.constant dense<0.000000e+00> : vector<16x96xf32>
    %4 = tpu.matmul %2, %3, %cst {dimension_numbers = #tpu.dot_dimension_numbers<[1], [0], [0], [1], [0, 0, 1, 1], [], []>} : vector<16x32xbf16>, vector<32x96xbf16>, vector<16x96xf32> -> vector<16x96xf32>
    %c0_3 = arith.constant 0 : index
    %c0_4 = arith.constant 0 : index
    %5 = vector.load %arg4[%c0_3, %c0_4] : memref<1x96xf32, #tpu.memory_space<vmem>>, vector<1x96xf32>
    %6 = vector.broadcast %5 : vector<1x96xf32> to vector<16x96xf32>
    %7 = arith.addf %4, %6 : vector<16x96xf32>
    %c0_5 = arith.constant 0 : index
    %c0_6 = arith.constant 0 : index
    %8 = vector.load %arg5[%c0_5, %c0_6] : memref<16x96xf32, #tpu.memory_space<vmem>>, vector<16x96xf32>
    tpu.vector_store %arg5[%c0_5, %c0_6], %7 {strides = array<i32>} : memref<16x96xf32, #tpu.memory_space<vmem>>, vector<16x96xf32>,
    return
  }
  func.func @transform_0(%arg0: i32, %arg1: i32) -> (i32, i32) {
    %c0_i32 = arith.constant 0 : i32
    %c0_i32_0 = arith.constant 0 : i32
    return %arg1, %c0_i32 : i32, i32
  }
  func.func @transform_1(%arg0: i32, %arg1: i32) -> (i32, i32) {
    %c0_i32 = arith.constant 0 : i32
    %c0_i32_0 = arith.constant 0 : i32
    return %c0_i32, %arg0 : i32, i32
  }
  func.func @transform_2(%arg0: i32, %arg1: i32) -> (i32, i32) {
    %c0_i32 = arith.constant 0 : i32
    %c0_i32_0 = arith.constant 0 : i32
    return %c0_i32, %arg0 : i32, i32
  }
  func.func @transform_3(%arg0: i32, %arg1: i32) -> (i32, i32) {
    %c0_i32 = arith.constant 0 : i32
    return %arg1, %arg0 : i32, i32
  }
}

</mosaic_0001>

<bundles_post_ra>
// kernel: tpu_custom_call.1
= control target key start
LH: loop header
LB: loop body
LE: loop exit
PB: predicated region body
PF: predicated region fallthrough
CT: control target
= control target key end

     0   :  { %8 = vsyncpa [#allocation3], 0  ;;  %s293_s0 = inlined_call_operand.hbm [shape: f32[16,32], index: 0, kind: input, shape index: {}]   ;;  %s294_s1 = inlined_call_operand.hbm [shape: f32[32,96], index: 1, kind: input, shape index: {}]   ;;  %s295_s2 = inlined_call_operand.vmem [shape: f32[1,96], index: 2, kind: input, shape index: {}]   ;;  %s296_s3 = inlined_call_operand.hbm [shape: f32[16,96], index: 3, kind: output, shape index: {}]  }
   0x1   :  { %9 = vsyncpa [#allocation6], 0 }
   0x2   :  { %10 = vsyncpa [#allocation4], 0  ;;  %s218_s12 = smov [#allocation2]   ;;  %s146_s16 = scalar_lea.hbm %s293_s0, 256 }
   0x3   :  { %s16_s13 = sshll.u32 %s218_s12, 4  ;;  %p147_p0 = scmp.ne.s32.totalorder %s293_s0, %s146_s16  ;;  %s17_s13 = int_to_ptr.vmem [resolvable:$true] %s16_s13 }
   0x4   :  { %p150_p1 = scmp.lt.u32.totalorder %s146_s16, %s293_s0 }
   0x6   :  { %p152_p2 = pnand %p150_p1, %p147_p0 }
   0x8   :  { %155 = shalt.err (!%p152_p2)
}
   0x9   :  { %s156_s21 = scalar_lea.vmem %s17_s13, 256  ;;  %p161_p4 = scmp.lt.s32.totalorder %s17_s13, %s17_s13 }
   0xa   :  { %p157_p3 = scmp.ne.s32.totalorder %s17_s13, %s156_s21  ;;  %p162_p5 = scmp.lt.s32.totalorder %s156_s21, %s156_s21 }
   0xc   :  { %p163_p6 = por %p162_p5, %p161_p4 }
   0xe   :  { %p164_p7 = pnand %p163_p6, %p157_p3 }
  0x10   :  { %167 = shalt.err (!%p164_p7)
}
  0x11   :  { %s219_s22 = smov 128   ;;  %s220_s23 = smov 8  }
  0x12   :  { %22 = dma.hbm_to_vmem [thread:$0]  %s293_s0, 256, %s17_s13, [#allocation3], %s219_s22, %s219_s22, %s220_s23  }
  0x13   :  { %s221_s26 = smov [#allocation5]   ;;  %s168_s30 = scalar_lea.hbm %s294_s1, 512 }
  0x14   :  { %s28_s27 = sshll.u32 %s221_s26, 4  ;;  %p169_p8 = scmp.ne.s32.totalorder %s294_s1, %s168_s30  ;;  %s29_s27 = int_to_ptr.vmem [resolvable:$true] %s28_s27 }
  0x15   :  { %p172_p9 = scmp.lt.u32.totalorder %s168_s30, %s294_s1 }
  0x17   :  { %p174_p10 = pnand %p172_p9, %p169_p8 }
  0x19   :  { %177 = shalt.err (!%p174_p10)
}
  0x1a   :  { %s178_s8 = scalar_lea.vmem %s29_s27, 512  ;;  %p183_p12 = scmp.lt.s32.totalorder %s29_s27, %s29_s27 }
  0x1b   :  { %p179_p11 = scmp.ne.s32.totalorder %s29_s27, %s178_s8  ;;  %p184_p13 = scmp.lt.s32.totalorder %s178_s8, %s178_s8 }
  0x1d   :  { %p185_p0 = por %p184_p13, %p183_p12 }
  0x1f   :  { %p186_p1 = pnand %p185_p0, %p179_p11 }
  0x21   :  { %189 = shalt.err (!%p186_p1)
}
  0x22   :  { %34 = dma.hbm_to_vmem [thread:$0]  %s294_s1, 512, %s29_s27, [#allocation6], %s219_s22, %s219_s22, %s220_s23  }
  0x23   :  { %212 = dma.done.wait [#allocation3], 256  }
  0x24   :  { %213 = vsyncadd [#allocation3], 4294967040 }
  0x25   :  { %214 = dma.done.wait [#allocation6], 512  }
  0x26   :  { %215 = vsyncadd [#allocation6], 4294966784  ;;  %v222_v0 = vmov 0.0   ;;  %vm223_vm0 = vmmov 0   ;;  %v46_v1 = vld [vmem:[#allocation5] sm:$0xff]  ;;  %v47_v2 = vld [vmem:[#allocation5 + $0x8] sm:$0xff] }
  0x27   :  { %131 = vmatprep.subr.bf16.mxu0 %v222_v0  ;;  %135 = vmatprep.mubr.msk.bf16.mxu0 %vm223_vm0, %v222_v0  ;;  %v48_v3 = vld [vmem:[#allocation5 + $0x10] sm:$0xff]  ;;  %v51_v4 = vpack.c.bf16 %v47_v2, %v46_v1  ;;  %v49_v5 = vld [vmem:[#allocation5 + $0x18] sm:$0xff]  ;;  %vm60_vm1 = vcmask 261120   ;;  %vm105_vm2 = vcmask 785408   ;;  %s224_s11 = smov [#allocation7]  }
  0x28   :  { %v52_v6 = vpack.c.bf16 %v49_v5, %v48_v3  ;;  %v44_v7 = vld [vmem:[#allocation2] sm:$0xff]  ;;  %v45_v8 = vld [vmem:[#allocation2 + $0x8] sm:$0xff]  ;;  %s113_s12 = sshll.u32 %s224_s11, 4  ;;  %s114_s12 = int_to_ptr.vmem [resolvable:$true] %s113_s12 }
  0x29   :  { %132 = vmatpush3.bf16.msra.mxu0 %v51_v4  ;;  %v50_v9 = vpack.c.bf16 %v45_v8, %v44_v7  ;;  %v126_v10 = vld [vmem:[%s295_s2] ss:$0 sm:$0xff]  ;;  %s190_s13 = scalar_lea.vmem %s114_s12, 256  ;;  %p195_p3 = scmp.lt.s32.totalorder %s114_s12, %s114_s12 }
  0x2a   :  { %133 = vmatprep.subr.bf16.mxu0 %v222_v0  ;;  %p191_p2 = scmp.ne.s32.totalorder %s114_s12, %s190_s13  ;;  %p196_p4 = scmp.lt.s32.totalorder %s190_s13, %s190_s13 }
  0x2c   :  { %p197_p5 = por %p196_p4, %p195_p3 }
  0x2d   :  { %134 = vmatpush3.bf16.msra.mxu0 %v52_v6 }
  0x2e   :  { %p198_p6 = pnand %p197_p5, %p191_p2 }
  0x30   :  { %136 = vmatmul.mubr.msk.bf16.vlgmr.msra.gmra.mrb[0].mxu0 %vm60_vm1, %v50_v9 }
 0x103   :  { %v98_v11 = vpop.f32.mrb[0].mxu0 }
 0x104   :  { %v99_v12 = vadd.f32 %v126_v10, %v98_v11  ;;  %v137_v13 = vpop.f32.mrb[1].mxu0 }
 0x105   :  { %v101_v14 = vpop.f32.mrb[2].mxu0 }
 0x106   :  { %v102_v15 = vadd.f32 %v126_v10, %v101_v14  ;;  %v138_v16 = vpop.f32.mrb[3].mxu0  ;;  %106 = vst.msk [vmem:[#allocation7] sm:$0xff] %vm105_vm2, %v99_v12 }
 0x108   :  { %107 = vst.msk [vmem:[#allocation7 + $0x8] sm:$0xff] %vm105_vm2, %v102_v15 }
 0x109   :  { %201 = shalt.err (!%p198_p6)
}
 0x10a   :  { %s202_s15 = scalar_lea.hbm %s296_s3, 256 }
 0x10b   :  { %p203_p7 = scmp.ne.s32.totalorder %s296_s3, %s202_s15  ;;  %p206_p8 = scmp.lt.u32.totalorder %s202_s15, %s296_s3 }
 0x10d   :  { %p208_p9 = pnand %p206_p8, %p203_p7 }
 0x10f   :  { %211 = shalt.err (!%p208_p9)
}
 0x110   :  { %119 = dma.vmem_to_hbm [thread:$0]  %s114_s12, 256, %s296_s3, [#allocation4], %s219_s22, %s219_s22, %s220_s23  }
 0x111   :  { %216 = dma.done.wait [#allocation4], 256  }
 0x112   :  { %217 = vsyncadd [#allocation4], 4294967040 }
 0x113   :  { %123 = vsyncpa [#allocation3], 1 }
 0x114   :  { %124 = vsyncpa [#allocation6], 1 }
 0x115   :  { %125 = vsyncpa [#allocation4], 1 }

</bundles_post_ra>
